<compile_context>
chip_gen: v6e
topology: v6e:2x2x1
jax: 0.10.0
libtpu: 0.0.40
codegen_flags: <defaults>
</compile_context>

<pallas_src>
import jax
import jax.numpy as jnp
from jax.experimental import pallas as pl
from jax.experimental.pallas import tpu as pltpu


def _linear_kernel(x_ref, wb_ref, o_ref):
    # x_ref:  (in_f, 1)      flattened input as a column
    # wb_ref: (in_f + 1, out) rows 0..in_f-1 = W^T, last row = bias
    # o_ref:  (1, out)        lane-dense result row
    in_f = x_ref.shape[0]
    w = wb_ref[0:in_f, :]            # (in_f, out)  static slice: zero cost
    b = wb_ref[in_f:in_f + 1, :]     # (1, out)
    prod = w * x_ref[...]            # VPU lane-broadcast multiply -> (in_f, out)
    # XLU sublane reduce + VPU bias add; MXU never touched.
    o_ref[...] = jnp.sum(prod, axis=0, keepdims=True) + b


def pack_params(weight, bias):
    """One-time (outside the hot path) packing of Linear params.

    weight: (out_f, in_f) PyTorch layout.  bias: (out_f,).
    Returns (in_f + 1, out_f): rows 0..in_f-1 = W^T, row in_f = bias.
    """
    return jnp.concatenate([weight.T, bias[None, :]], axis=0)


@jax.jit
def gcn_test_forward(x, wb):
    """Equivalent of GCN_test.forward.

    Args:
      x:  float32 array with exactly in_f (=4) elements (any shape).
      wb: (in_f + 1, out_f) packed params from pack_params().
    Returns:
      (out_f,) float32.
    """
    in_f = wb.shape[0] - 1
    out_f = wb.shape[1]
    x_col = jnp.reshape(x, (in_f, 1))  # torch.flatten -> column vector

    flops = 2 * in_f * out_f + out_f
    bytes_accessed = (x_col.size + wb.size + out_f) * 4

    out = pl.pallas_call(
        _linear_kernel,
        out_shape=jax.ShapeDtypeStruct((1, out_f), wb.dtype),
        in_specs=[
            pl.BlockSpec(memory_space=pltpu.VMEM),
            pl.BlockSpec(memory_space=pltpu.VMEM),
        ],
        out_specs=pl.BlockSpec(memory_space=pltpu.VMEM),
        cost_estimate=pl.CostEstimate(
            flops=flops, transcendentals=0, bytes_accessed=bytes_accessed),
    )(x_col, wb)
    return jnp.reshape(out, (out_f,))  # (1, out_f) -> (out_f,): pure bitcast


if __name__ == "__main__":
    key = jax.random.PRNGKey(0)
    k_x, k_w, k_b = jax.random.split(key, 3)

    # Input with 4 total elements (torch.flatten -> (4,), then Linear(4, 3)).
    x = jax.random.normal(k_x, (2, 2), dtype=jnp.float32)

    # Deterministic Linear(4, 3) params (uniform like torch's default init).
    in_f, out_f = 4, 3
    bound = 1.0 / (in_f ** 0.5)
    weight = jax.random.uniform(k_w, (out_f, in_f), jnp.float32, -bound, bound)
    bias = jax.random.uniform(k_b, (out_f,), jnp.float32, -bound, bound)

    # One-time parameter packing (outside the per-call hot path).
    wb = pack_params(weight, bias)

    y = gcn_test_forward(x, wb)
    jax.block_until_ready(y)

    # Plain-JAX reference: x.flatten() @ W^T + b
    y_ref = jnp.reshape(x, (-1,)) @ weight.T + bias
    assert y.shape == (out_f,)
    assert jnp.allclose(y, y_ref, atol=1e-5, rtol=1e-5), (y, y_ref)

    print("KERNEL_OK")
</pallas_src>

<mosaic_0001>
module attributes {stable_mosaic.version = 11 : i64} {
  func.func @_linear_kernel(%arg0: memref<4x1xf32, #tpu.memory_space<vmem>>, %arg1: memref<5x3xf32, #tpu.memory_space<vmem>>, %arg2: memref<1x3xf32, #tpu.memory_space<vmem>>) attributes {dimension_semantics = [], scalar_prefetch = 0 : i64, scratch_operands = 0 : i64, tpu.core_type = #tpu.core_type<tc>} {
    %c0 = arith.constant 0 : index
    %c0_0 = arith.constant 0 : index
    %0 = vector.load %arg1[%c0, %c0_0] : memref<5x3xf32, #tpu.memory_space<vmem>>, vector<4x3xf32>
    %c4 = arith.constant 4 : index
    %c0_1 = arith.constant 0 : index
    %1 = vector.load %arg1[%c4, %c0_1] : memref<5x3xf32, #tpu.memory_space<vmem>>, vector<1x3xf32>
    %c0_2 = arith.constant 0 : index
    %c0_3 = arith.constant 0 : index
    %2 = vector.load %arg0[%c0_2, %c0_3] : memref<4x1xf32, #tpu.memory_space<vmem>>, vector<4x1xf32>
    %3 = vector.broadcast %2 : vector<4x1xf32> to vector<4x3xf32>
    %4 = arith.mulf %0, %3 : vector<4x3xf32>
    %cst = arith.constant dense<0.000000e+00> : vector<3xf32>
    %5 = vector.multi_reduction <add>, %4, %cst [0] : vector<4x3xf32> to vector<3xf32>
    %6 = vector.shape_cast %5 : vector<3xf32> to vector<1x3xf32>
    %7 = arith.addf %6, %1 : vector<1x3xf32>
    %c0_4 = arith.constant 0 : index
    %c0_5 = arith.constant 0 : index
    %8 = vector.load %arg2[%c0_4, %c0_5] : memref<1x3xf32, #tpu.memory_space<vmem>>, vector<1x3xf32>
    tpu.vector_store %arg2[%c0_4, %c0_5], %7 {strides = array<i32>} : memref<1x3xf32, #tpu.memory_space<vmem>>, vector<1x3xf32>,
    return
  }
}

</mosaic_0001>

<bundles_post_ra>
// kernel: gcn_test_forward.1
= control target key start
LH: loop header
LB: loop body
LE: loop exit
PB: predicated region body
PF: predicated region fallthrough
CT: control target
= control target key end

     0   :  { %v71_v1 = vmov 0   ;;  %s100_s0 = inlined_call_operand.vmem [shape: f32[4,1], index: 0, kind: input, shape index: {}]   ;;  %s101_s1 = inlined_call_operand.vmem [shape: f32[5,3], index: 1, kind: input, shape index: {}]   ;;  %s102_s2 = inlined_call_operand.hbm [shape: f32[1,3], index: 2, kind: output, shape index: {}]  }
   0x1   :  { %v14_v0 = vld [vmem:[%s100_s0] sm:$0xf]  ;;  %48 = vset.pattern.permute.xlu0 %v71_v1 }
   0x2   :  { %7 = vsyncpa [#allocation3], 0  ;;  %17 = vperm.xlu0 %48, %v14_v0   ;;  %v12_v2 = vld [vmem:[%s101_s1] sm:$0xf]  ;;  %vm21_vm0 = vcmask 19456   ;;  %s72_s0 = smov [#allocation2]  }
   0x3   :  { %v13_v11 = vld [vmem:[%s101_s1 + $0x4] sm:$0x1]  ;;  %s38_s15 = sshll.u32 %s72_s0, 4  ;;  %vm30_vm1 = vcmask 16384   ;;  %s39_s15 = int_to_ptr.vmem [resolvable:$true] %s38_s15 }
   0x4   :  { %s49_s16 = scalar_lea.vmem %s39_s15, 16  ;;  %s53_s17 = scalar_lea.vmem %s39_s15, 32 }
   0x5   :  { %p50_p0 = scmp.ne.s32.totalorder %s39_s15, %s49_s16  ;;  %p54_p1 = scmp.lt.s32.totalorder %s39_s15, %s39_s15 }
   0x6   :  { %p55_p2 = scmp.lt.s32.totalorder %s53_s17, %s49_s16 }
   0x8   :  { %p56_p3 = por %p55_p2, %p54_p1 }
   0xa   :  { %p57_p4 = pnand %p56_p3, %p50_p0 }
  0x7d   :  { %v18_v3 = vpop.permute.xlu0 %17 }
  0x7e   :  { %v20_v4 = vmul.f32 %v18_v3, %v12_v2 }
  0x80   :  { %v22_v5 = vsel %vm21_vm0, %v20_v4, 0.0 }
  0x81   :  { %v23_v6 = vrot.slane %v22_v5, 4 }
  0x83   :  { %v24_v7 = vadd.f32 %v23_v6, %v22_v5 }
  0x85   :  { %v25_v8 = vrot.slane %v24_v7, 2 }
  0x87   :  { %v26_v9 = vadd.f32 %v25_v8, %v24_v7 }
  0x89   :  { %v27_v10 = vrot.slane %v26_v9, 1 }
  0x8b   :  { %v28_v12 = vadd.f32 %v27_v10, %v26_v9 }
  0x8d   :  { %v29_v13 = vadd.f32 %v28_v12, %v13_v11 }
  0x8f   :  { %31 = vst.msk [vmem:[#allocation2] sm:$0x1] %vm30_vm1, %v29_v13 }
  0x90   :  { %60 = shalt.err (!%p57_p4)
}
  0x91   :  { %41 = dma.vmem_to_hbm [thread:$0]  %s39_s15, 16, %s102_s2, [#allocation3]  }
  0x92   :  { %69 = dma.done.wait [#allocation3], 16  }
  0x93   :  { %70 = vsyncadd [#allocation3], 4294967280 }
  0x94   :  { %45 = vsyncpa [#allocation3], 1 }

</bundles_post_ra>
